<compile_context>
chip_gen: v6e
topology: v6e:2x2x1
jax: 0.10.0
libtpu: 0.0.40
codegen_flags: <defaults>
</compile_context>

<pallas_src>
import functools

import jax
import jax.numpy as jnp
from jax.experimental import pallas as pl
from jax.experimental.pallas import tpu as pltpu

_LANE = 128  # vreg lane width (last dim granularity)


def _round_up(x, m):
    return ((x + m - 1) // m) * m


def _fused_mlp_kernel(*refs, num_layers, compute_dtype):
    """refs = (x_ref, w0, b0, w1, b1, ..., w_{L-1}, b_{L-1}, o_ref).

    x_ref: (TILE_M, D0p)    compute_dtype
    w_i:   (Dip, D{i+1}p)   compute_dtype (pre-cast on host)
    b_i:   (1, D{i+1}p)     f32
    o_ref: (TILE_M, DLp)    compute_dtype
    The whole layer chain runs on the current M-tile; the activation never
    leaves VMEM/vregs between layers.
    """
    x_ref = refs[0]
    o_ref = refs[1 + 2 * num_layers]

    h = x_ref[...]
    for i in range(num_layers):
        w_ref = refs[1 + 2 * i]
        b_ref = refs[2 + 2 * i]
        acc = jnp.dot(h, w_ref[...], preferred_element_type=jnp.float32)
        acc = acc + b_ref[...]                       # f32 + f32 (broadcast row)
        if i < num_layers - 1:
            acc = jnp.maximum(acc, 0.0).astype(compute_dtype)
        h = acc
    o_ref[...] = h.astype(o_ref.dtype)


def _vmem_capacity_bytes():
    try:
        return int(pltpu.get_tpu_info().vmem_capacity_bytes)
    except Exception:
        return 64 << 20  # conservative: v7x per-TensorCore VMEM


def mlp_forward(x, params, *, tile_m=1024, compute_dtype=jnp.bfloat16,
                single_buffer_weights=True):
    """Fused MLP forward: x -> [Linear + ReLU] * (L-1) -> Linear.

    x: (..., input_dim), channels-last exactly like nn.Linear.
    params: list of (w, b) with w stored pre-transposed as (n_in, n_out), b (n_out,).
    """
    lead = x.shape[:-1]
    in_dim = x.shape[-1]
    out_dim = params[-1][0].shape[1]
    num_layers = len(params)

    cdt = jnp.dtype(compute_dtype)
    cdt_size = cdt.itemsize
    sublane = 8 * (4 // cdt_size)       # 8 rows for f32, 16 for bf16 packing

    x2d = x.reshape(-1, in_dim)
    M = x2d.shape[0]

    # Lane-pad every feature dim to a multiple of 128 (lane-dense, no vst.msk).
    dims = [in_dim] + [w.shape[1] for w, _ in params]
    pdims = [_round_up(d, _LANE) for d in dims]

    # --- M tiling --------------------------------------------------------
    m_ceil = _round_up(M, sublane)
    tile_m_eff = min(_round_up(tile_m, sublane), m_ceil)
    # Give v7x's second TensorCore work: >=2 tiles along the parallel M axis
    # whenever M can be split at sublane granularity (no effect on v5e/v6e).
    if m_ceil // tile_m_eff < 2 and m_ceil >= 2 * sublane:
        tile_m_eff = _round_up((m_ceil + 1) // 2, sublane)

    weight_bytes = sum(pdims[i] * pdims[i + 1] * cdt_size + 4 * pdims[i + 1]
                       for i in range(num_layers))
    wbuf = 1 if single_buffer_weights else 2

    def vmem_needed(rows):
        # Two consecutive live activations of the widest layer pair.
        act_live = max(rows * (pdims[i] * cdt_size + pdims[i + 1] * 4)
                       for i in range(num_layers))
        return (2 * rows * pdims[0] * cdt_size       # double-buffered x tile
                + 2 * rows * pdims[-1] * cdt_size    # double-buffered out tile
                + wbuf * weight_bytes                # resident weights+biases
                + act_live)

    vmem_cap = _vmem_capacity_bytes()
    budget = (vmem_cap * 3) // 4                     # ~48 MiB v7x, ~96 MiB v5e/v6e
    while tile_m_eff > sublane and vmem_needed(tile_m_eff) > budget:
        tile_m_eff = _round_up(tile_m_eff // 2, sublane)
    # TODO(synk): if the weights alone exceed the VMEM budget, add a K-tiled
    # fallback (extra "arbitrary" grid axis + f32 VMEM accumulator) instead of
    # keeping all layer weights resident.

    m_padded = _round_up(M, tile_m_eff)
    grid_m = m_padded // tile_m_eff

    # --- host-side padding / casting (no casts inside the kernel) ---------
    xp = jnp.zeros((m_padded, pdims[0]), cdt).at[:M, :in_dim].set(
        x2d.astype(cdt))

    wb_mode = pl.Buffered(1) if single_buffer_weights else None
    flat_wb = []
    in_specs = [pl.BlockSpec((tile_m_eff, pdims[0]), lambda i: (i, 0))]
    for i, (w, b) in enumerate(params):
        wp = jnp.zeros((pdims[i], pdims[i + 1]), cdt).at[
            :w.shape[0], :w.shape[1]].set(w.astype(cdt))
        bp = jnp.zeros((1, pdims[i + 1]), jnp.float32).at[
            0, :b.shape[0]].set(b.astype(jnp.float32))
        flat_wb.extend([wp, bp])
        # Resident across all M-tiles: constant block index, single-buffered.
        in_specs.append(pl.BlockSpec(wp.shape, lambda i: (0, 0),
                                     pipeline_mode=wb_mode))
        in_specs.append(pl.BlockSpec(bp.shape, lambda i: (0, 0),
                                     pipeline_mode=wb_mode))

    out_spec = pl.BlockSpec((tile_m_eff, pdims[-1]), lambda i: (i, 0))

    vmem_limit = int(min(max(vmem_needed(tile_m_eff) * 5 // 4 + (4 << 20),
                             32 << 20), budget))

    flops = 2 * m_padded * sum(pdims[i] * pdims[i + 1]
                               for i in range(num_layers))
    bytes_accessed = (m_padded * (pdims[0] + pdims[-1]) * cdt_size
                      + weight_bytes)

    kernel = functools.partial(_fused_mlp_kernel, num_layers=num_layers,
                               compute_dtype=cdt)

    out_p = pl.pallas_call(
        kernel,
        out_shape=jax.ShapeDtypeStruct((m_padded, pdims[-1]), cdt),
        grid_spec=pltpu.PrefetchScalarGridSpec(
            num_scalar_prefetch=0,
            grid=(grid_m,),
            in_specs=in_specs,
            out_specs=out_spec,
        ),
        compiler_params=pltpu.CompilerParams(
            dimension_semantics=("parallel",),   # shard M-tiles across TCs (v7x)
            vmem_limit_bytes=vmem_limit,
        ),
        cost_estimate=pl.CostEstimate(flops=flops, transcendentals=0,
                                      bytes_accessed=bytes_accessed),
    )(xp, *flat_wb)

    return out_p[:M, :out_dim].astype(x.dtype).reshape(*lead, out_dim)


def init_mlp_params(key, input_dim, hidden_dim, output_dim, num_layers):
    """Deterministic init matching nn.Linear default (uniform +/- 1/sqrt(fan_in)).

    Weights are stored pre-transposed as (n_in, n_out) so the kernel does x @ W.
    """
    h = [hidden_dim] * (num_layers - 1)
    dims_in = [input_dim] + h
    dims_out = h + [output_dim]
    params = []
    for n_in, n_out in zip(dims_in, dims_out):
        key, kw, kb = jax.random.split(key, 3)
        bound = 1.0 / (n_in ** 0.5)
        w = jax.random.uniform(kw, (n_in, n_out), jnp.float32, -bound, bound)
        b = jax.random.uniform(kb, (n_out,), jnp.float32, -bound, bound)
        params.append((w, b))
    return params


def mlp_reference(x, params):
    num_layers = len(params)
    for i, (w, b) in enumerate(params):
        x = jnp.dot(x, w, precision=jax.lax.Precision.HIGHEST) + b
        if i < num_layers - 1:
            x = jnp.maximum(x, 0.0)
    return x


if __name__ == "__main__":
    key = jax.random.PRNGKey(0)
    kx, kp = jax.random.split(key)

    # Small shapes consistent with Mask2Former usage: (num_queries, batch, dim)
    seq, batch = 8, 2
    input_dim, hidden_dim, output_dim, num_layers = 16, 32, 16, 3

    x = jax.random.normal(kx, (seq, batch, input_dim), jnp.float32)
    params = init_mlp_params(kp, input_dim, hidden_dim, output_dim, num_layers)

    try:
        fwd = jax.jit(mlp_forward)
        out = jax.block_until_ready(fwd(x, params))
    except Exception:
        # Safety net: fall back to default (double-buffered) weight blocks if
        # the toolchain rejects single-buffered constant blocks.
        fwd = jax.jit(functools.partial(mlp_forward, single_buffer_weights=False))
        out = jax.block_until_ready(fwd(x, params))

    ref = mlp_reference(x, params)
    assert out.shape == (seq, batch, output_dim)
    # bf16 storage/compute (f32 accumulation) -> loosened tolerance vs f32 ref.
    assert jnp.allclose(out, ref, atol=3e-2, rtol=3e-2), float(
        jnp.max(jnp.abs(out - ref)))

    print("KERNEL_OK")
</pallas_src>

<mosaic_0001>
module attributes {stable_mosaic.version = 11 : i64} {
  func.func @_fused_mlp_kernel(%arg0: i32, %arg1: memref<16x128xbf16, #tpu.memory_space<vmem>>, %arg2: memref<128x128xbf16, #tpu.memory_space<vmem>>, %arg3: memref<1x128xf32, #tpu.memory_space<vmem>>, %arg4: memref<128x128xbf16, #tpu.memory_space<vmem>>, %arg5: memref<1x128xf32, #tpu.memory_space<vmem>>, %arg6: memref<128x128xbf16, #tpu.memory_space<vmem>>, %arg7: memref<1x128xf32, #tpu.memory_space<vmem>>, %arg8: memref<16x128xbf16, #tpu.memory_space<vmem>>) attributes {dimension_semantics = [#tpu.dimension_semantics<parallel>], iteration_bounds = array<i64: 1>, scalar_prefetch = 0 : i64, scratch_operands = 0 : i64, tpu.core_type = #tpu.core_type<tc>, window_params = [{transform_indices = @transform_0, window_bounds = array<i64: 16, 128>}, {pipeline_mode = #tpu.pipeline_mode<synchronous>, transform_indices = @transform_1, window_bounds = array<i64: 128, 128>}, {pipeline_mode = #tpu.pipeline_mode<synchronous>, transform_indices = @transform_2, window_bounds = array<i64: 1, 128>}, {pipeline_mode = #tpu.pipeline_mode<synchronous>, transform_indices = @transform_3, window_bounds = array<i64: 128, 128>}, {pipeline_mode = #tpu.pipeline_mode<synchronous>, transform_indices = @transform_4, window_bounds = array<i64: 1, 128>}, {pipeline_mode = #tpu.pipeline_mode<synchronous>, transform_indices = @transform_5, window_bounds = array<i64: 128, 128>}, {pipeline_mode = #tpu.pipeline_mode<synchronous>, transform_indices = @transform_6, window_bounds = array<i64: 1, 128>}, {transform_indices = @transform_7, window_bounds = array<i64: 16, 128>}]} {
    %c0 = arith.constant 0 : index
    %c0_0 = arith.constant 0 : index
    %0 = vector.load %arg1[%c0, %c0_0] : memref<16x128xbf16, #tpu.memory_space<vmem>>, vector<16x128xbf16>
    %c0_1 = arith.constant 0 : index
    %c0_2 = arith.constant 0 : index
    %1 = vector.load %arg2[%c0_1, %c0_2] : memref<128x128xbf16, #tpu.memory_space<vmem>>, vector<128x128xbf16>
    %cst = arith.constant dense<0.000000e+00> : vector<16x128xf32>
    %2 = tpu.matmul %0, %1, %cst {dimension_numbers = #tpu.dot_dimension_numbers<[1], [0], [0], [1], [0, 0, 1, 1], [], []>} : vector<16x128xbf16>, vector<128x128xbf16>, vector<16x128xf32> -> vector<16x128xf32>
    %c0_3 = arith.constant 0 : index
    %c0_4 = arith.constant 0 : index
    %3 = vector.load %arg3[%c0_3, %c0_4] : memref<1x128xf32, #tpu.memory_space<vmem>>, vector<1x128xf32>
    %4 = vector.broadcast %3 : vector<1x128xf32> to vector<16x128xf32>
    %5 = arith.addf %2, %4 : vector<16x128xf32>
    %cst_5 = arith.constant 0.000000e+00 : f32
    %6 = vector.broadcast %cst_5 : f32 to vector<16x128xf32>
    %7 = arith.maximumf %5, %6 : vector<16x128xf32>
    %8 = arith.truncf %7 : vector<16x128xf32> to vector<16x128xbf16>
    %c0_6 = arith.constant 0 : index
    %c0_7 = arith.constant 0 : index
    %9 = vector.load %arg4[%c0_6, %c0_7] : memref<128x128xbf16, #tpu.memory_space<vmem>>, vector<128x128xbf16>
    %cst_8 = arith.constant dense<0.000000e+00> : vector<16x128xf32>
    %10 = tpu.matmul %8, %9, %cst_8 {dimension_numbers = #tpu.dot_dimension_numbers<[1], [0], [0], [1], [0, 0, 1, 1], [], []>} : vector<16x128xbf16>, vector<128x128xbf16>, vector<16x128xf32> -> vector<16x128xf32>
    %c0_9 = arith.constant 0 : index
    %c0_10 = arith.constant 0 : index
    %11 = vector.load %arg5[%c0_9, %c0_10] : memref<1x128xf32, #tpu.memory_space<vmem>>, vector<1x128xf32>
    %12 = vector.broadcast %11 : vector<1x128xf32> to vector<16x128xf32>
    %13 = arith.addf %10, %12 : vector<16x128xf32>
    %cst_11 = arith.constant 0.000000e+00 : f32
    %14 = vector.broadcast %cst_11 : f32 to vector<16x128xf32>
    %15 = arith.maximumf %13, %14 : vector<16x128xf32>
    %16 = arith.truncf %15 : vector<16x128xf32> to vector<16x128xbf16>
    %c0_12 = arith.constant 0 : index
    %c0_13 = arith.constant 0 : index
    %17 = vector.load %arg6[%c0_12, %c0_13] : memref<128x128xbf16, #tpu.memory_space<vmem>>, vector<128x128xbf16>
    %cst_14 = arith.constant dense<0.000000e+00> : vector<16x128xf32>
    %18 = tpu.matmul %16, %17, %cst_14 {dimension_numbers = #tpu.dot_dimension_numbers<[1], [0], [0], [1], [0, 0, 1, 1], [], []>} : vector<16x128xbf16>, vector<128x128xbf16>, vector<16x128xf32> -> vector<16x128xf32>
    %c0_15 = arith.constant 0 : index
    %c0_16 = arith.constant 0 : index
    %19 = vector.load %arg7[%c0_15, %c0_16] : memref<1x128xf32, #tpu.memory_space<vmem>>, vector<1x128xf32>
    %20 = vector.broadcast %19 : vector<1x128xf32> to vector<16x128xf32>
    %21 = arith.addf %18, %20 : vector<16x128xf32>
    %22 = arith.truncf %21 : vector<16x128xf32> to vector<16x128xbf16>
    %c0_17 = arith.constant 0 : index
    %c0_18 = arith.constant 0 : index
    %23 = vector.load %arg8[%c0_17, %c0_18] : memref<16x128xbf16, #tpu.memory_space<vmem>>, vector<16x128xbf16>
    tpu.vector_store %arg8[%c0_17, %c0_18], %22 {strides = array<i32>} : memref<16x128xbf16, #tpu.memory_space<vmem>>, vector<16x128xbf16>,
    return
  }
  func.func @transform_0(%arg0: i32) -> (i32, i32) {
    %c0_i32 = arith.constant 0 : i32
    %c0_i32_0 = arith.constant 0 : i32
    return %arg0, %c0_i32 : i32, i32
  }
  func.func @transform_1(%arg0: i32) -> (i32, i32) {
    %c0_i32 = arith.constant 0 : i32
    %c0_i32_0 = arith.constant 0 : i32
    %c0_i32_1 = arith.constant 0 : i32
    return %c0_i32, %c0_i32_0 : i32, i32
  }
  func.func @transform_2(%arg0: i32) -> (i32, i32) {
    %c0_i32 = arith.constant 0 : i32
    %c0_i32_0 = arith.constant 0 : i32
    %c0_i32_1 = arith.constant 0 : i32
    return %c0_i32, %c0_i32_0 : i32, i32
  }
  func.func @transform_3(%arg0: i32) -> (i32, i32) {
    %c0_i32 = arith.constant 0 : i32
    %c0_i32_0 = arith.constant 0 : i32
    %c0_i32_1 = arith.constant 0 : i32
    return %c0_i32, %c0_i32_0 : i32, i32
  }
  func.func @transform_4(%arg0: i32) -> (i32, i32) {
    %c0_i32 = arith.constant 0 : i32
    %c0_i32_0 = arith.constant 0 : i32
    %c0_i32_1 = arith.constant 0 : i32
    return %c0_i32, %c0_i32_0 : i32, i32
  }
  func.func @transform_5(%arg0: i32) -> (i32, i32) {
    %c0_i32 = arith.constant 0 : i32
    %c0_i32_0 = arith.constant 0 : i32
    %c0_i32_1 = arith.constant 0 : i32
    return %c0_i32, %c0_i32_0 : i32, i32
  }
  func.func @transform_6(%arg0: i32) -> (i32, i32) {
    %c0_i32 = arith.constant 0 : i32
    %c0_i32_0 = arith.constant 0 : i32
    %c0_i32_1 = arith.constant 0 : i32
    return %c0_i32, %c0_i32_0 : i32, i32
  }
  func.func @transform_7(%arg0: i32) -> (i32, i32) {
    %c0_i32 = arith.constant 0 : i32
    %c0_i32_0 = arith.constant 0 : i32
    return %arg0, %c0_i32 : i32, i32
  }
}

module attributes {stable_mosaic.version = 11 : i64} {
  func.func @_fused_mlp_kernel(%arg0: i32, %arg1: memref<16x128xbf16, #tpu.memory_space<vmem>>, %arg2: memref<128x128xbf16, #tpu.memory_space<vmem>>, %arg3: memref<1x128xf32, #tpu.memory_space<vmem>>, %arg4: memref<128x128xbf16, #tpu.memory_space<vmem>>, %arg5: memref<1x128xf32, #tpu.memory_space<vmem>>, %arg6: memref<128x128xbf16, #tpu.memory_space<vmem>>, %arg7: memref<1x128xf32, #tpu.memory_space<vmem>>, %arg8: memref<16x128xbf16, #tpu.memory_space<vmem>>) attributes {dimension_semantics = [#tpu.dimension_semantics<parallel>], iteration_bounds = array<i64: 1>, scalar_prefetch = 0 : i64, scratch_operands = 0 : i64, tpu.core_type = #tpu.core_type<tc>, window_params = [{transform_indices = @transform_0, window_bounds = array<i64: 16, 128>}, {pipeline_mode = #tpu.pipeline_mode<synchronous>, transform_indices = @transform_1, window_bounds = array<i64: 128, 128>}, {pipeline_mode = #tpu.pipeline_mode<synchronous>, transform_indices = @transform_2, window_bounds = array<i64: 1, 128>}, {pipeline_mode = #tpu.pipeline_mode<synchronous>, transform_indices = @transform_3, window_bounds = array<i64: 128, 128>}, {pipeline_mode = #tpu.pipeline_mode<synchronous>, transform_indices = @transform_4, window_bounds = array<i64: 1, 128>}, {pipeline_mode = #tpu.pipeline_mode<synchronous>, transform_indices = @transform_5, window_bounds = array<i64: 128, 128>}, {pipeline_mode = #tpu.pipeline_mode<synchronous>, transform_indices = @transform_6, window_bounds = array<i64: 1, 128>}, {transform_indices = @transform_7, window_bounds = array<i64: 16, 128>}]} {
    %c0 = arith.constant 0 : index
    %c0_0 = arith.constant 0 : index
    %0 = vector.load %arg1[%c0, %c0_0] : memref<16x128xbf16, #tpu.memory_space<vmem>>, vector<16x128xbf16>
    %c0_1 = arith.constant 0 : index
    %c0_2 = arith.constant 0 : index
    %1 = vector.load %arg2[%c0_1, %c0_2] : memref<128x128xbf16, #tpu.memory_space<vmem>>, vector<128x128xbf16>
    %cst = arith.constant dense<0.000000e+00> : vector<16x128xf32>
    %2 = tpu.matmul %0, %1, %cst {dimension_numbers = #tpu.dot_dimension_numbers<[1], [0], [0], [1], [0, 0, 1, 1], [], []>} : vector<16x128xbf16>, vector<128x128xbf16>, vector<16x128xf32> -> vector<16x128xf32>
    %c0_3 = arith.constant 0 : index
    %c0_4 = arith.constant 0 : index
    %3 = vector.load %arg3[%c0_3, %c0_4] : memref<1x128xf32, #tpu.memory_space<vmem>>, vector<1x128xf32>
    %4 = vector.broadcast %3 : vector<1x128xf32> to vector<16x128xf32>
    %5 = arith.addf %2, %4 : vector<16x128xf32>
    %cst_5 = arith.constant 0.000000e+00 : f32
    %6 = vector.broadcast %cst_5 : f32 to vector<16x128xf32>
    %7 = arith.maximumf %5, %6 : vector<16x128xf32>
    %8 = arith.truncf %7 : vector<16x128xf32> to vector<16x128xbf16>
    %c0_6 = arith.constant 0 : index
    %c0_7 = arith.constant 0 : index
    %9 = vector.load %arg4[%c0_6, %c0_7] : memref<128x128xbf16, #tpu.memory_space<vmem>>, vector<128x128xbf16>
    %cst_8 = arith.constant dense<0.000000e+00> : vector<16x128xf32>
    %10 = tpu.matmul %8, %9, %cst_8 {dimension_numbers = #tpu.dot_dimension_numbers<[1], [0], [0], [1], [0, 0, 1, 1], [], []>} : vector<16x128xbf16>, vector<128x128xbf16>, vector<16x128xf32> -> vector<16x128xf32>
    %c0_9 = arith.constant 0 : index
    %c0_10 = arith.constant 0 : index
    %11 = vector.load %arg5[%c0_9, %c0_10] : memref<1x128xf32, #tpu.memory_space<vmem>>, vector<1x128xf32>
    %12 = vector.broadcast %11 : vector<1x128xf32> to vector<16x128xf32>
    %13 = arith.addf %10, %12 : vector<16x128xf32>
    %cst_11 = arith.constant 0.000000e+00 : f32
    %14 = vector.broadcast %cst_11 : f32 to vector<16x128xf32>
    %15 = arith.maximumf %13, %14 : vector<16x128xf32>
    %16 = arith.truncf %15 : vector<16x128xf32> to vector<16x128xbf16>
    %c0_12 = arith.constant 0 : index
    %c0_13 = arith.constant 0 : index
    %17 = vector.load %arg6[%c0_12, %c0_13] : memref<128x128xbf16, #tpu.memory_space<vmem>>, vector<128x128xbf16>
    %cst_14 = arith.constant dense<0.000000e+00> : vector<16x128xf32>
    %18 = tpu.matmul %16, %17, %cst_14 {dimension_numbers = #tpu.dot_dimension_numbers<[1], [0], [0], [1], [0, 0, 1, 1], [], []>} : vector<16x128xbf16>, vector<128x128xbf16>, vector<16x128xf32> -> vector<16x128xf32>
    %c0_15 = arith.constant 0 : index
    %c0_16 = arith.constant 0 : index
    %19 = vector.load %arg7[%c0_15, %c0_16] : memref<1x128xf32, #tpu.memory_space<vmem>>, vector<1x128xf32>
    %20 = vector.broadcast %19 : vector<1x128xf32> to vector<16x128xf32>
    %21 = arith.addf %18, %20 : vector<16x128xf32>
    %22 = arith.truncf %21 : vector<16x128xf32> to vector<16x128xbf16>
    %c0_17 = arith.constant 0 : index
    %c0_18 = arith.constant 0 : index
    %23 = vector.load %arg8[%c0_17, %c0_18] : memref<16x128xbf16, #tpu.memory_space<vmem>>, vector<16x128xbf16>
    tpu.vector_store %arg8[%c0_17, %c0_18], %22 {strides = array<i32>} : memref<16x128xbf16, #tpu.memory_space<vmem>>, vector<16x128xbf16>,
    return
  }
  func.func @transform_0(%arg0: i32) -> (i32, i32) {
    %c0_i32 = arith.constant 0 : i32
    %c0_i32_0 = arith.constant 0 : i32
    return %arg0, %c0_i32 : i32, i32
  }
  func.func @transform_1(%arg0: i32) -> (i32, i32) {
    %c0_i32 = arith.constant 0 : i32
    %c0_i32_0 = arith.constant 0 : i32
    %c0_i32_1 = arith.constant 0 : i32
    return %c0_i32, %c0_i32_0 : i32, i32
  }
  func.func @transform_2(%arg0: i32) -> (i32, i32) {
    %c0_i32 = arith.constant 0 : i32
    %c0_i32_0 = arith.constant 0 : i32
    %c0_i32_1 = arith.constant 0 : i32
    return %c0_i32, %c0_i32_0 : i32, i32
  }
  func.func @transform_3(%arg0: i32) -> (i32, i32) {
    %c0_i32 = arith.constant 0 : i32
    %c0_i32_0 = arith.constant 0 : i32
    %c0_i32_1 = arith.constant 0 : i32
    return %c0_i32, %c0_i32_0 : i32, i32
  }
  func.func @transform_4(%arg0: i32) -> (i32, i32) {
    %c0_i32 = arith.constant 0 : i32
    %c0_i32_0 = arith.constant 0 : i32
    %c0_i32_1 = arith.constant 0 : i32
    return %c0_i32, %c0_i32_0 : i32, i32
  }
  func.func @transform_5(%arg0: i32) -> (i32, i32) {
    %c0_i32 = arith.constant 0 : i32
    %c0_i32_0 = arith.constant 0 : i32
    %c0_i32_1 = arith.constant 0 : i32
    return %c0_i32, %c0_i32_0 : i32, i32
  }
  func.func @transform_6(%arg0: i32) -> (i32, i32) {
    %c0_i32 = arith.constant 0 : i32
    %c0_i32_0 = arith.constant 0 : i32
    %c0_i32_1 = arith.constant 0 : i32
    return %c0_i32, %c0_i32_0 : i32, i32
  }
  func.func @transform_7(%arg0: i32) -> (i32, i32) {
    %c0_i32 = arith.constant 0 : i32
    %c0_i32_0 = arith.constant 0 : i32
    return %arg0, %c0_i32 : i32, i32
  }
}

</mosaic_0001>

<bundles_post_ra>
// kernel: mlp_forward.1
= control target key start
LH: loop header
LB: loop body
LE: loop exit
PB: predicated region body
PF: predicated region fallthrough
CT: control target
= control target key end

     0   :  { %v542_v0 = vmov 0.0   ;;  %vm543_vm0 = vmmov 0   ;;  %s701_s1 = inlined_call_operand.vmem [shape: bf16[128,128], index: 1, kind: input, shape index: {}]   ;;  %s702_s3 = inlined_call_operand.vmem [shape: bf16[128,128], index: 3, kind: input, shape index: {}]   ;;  %s703_s0 = inlined_call_operand.vmem [shape: bf16[16,128], index: 0, kind: input, shape index: {}]   ;;  %s704_s5 = inlined_call_operand.vmem [shape: bf16[128,128], index: 5, kind: input, shape index: {}]   ;;  %s705_s2 = inlined_call_operand.vmem [shape: f32[1,128], index: 2, kind: input, shape index: {}]   ;;  %s706_s4 = inlined_call_operand.vmem [shape: f32[1,128], index: 4, kind: input, shape index: {}]   ;;  %s707_s6 = inlined_call_operand.vmem [shape: f32[1,128], index: 6, kind: input, shape index: {}]   ;;  %s708_s7 = inlined_call_operand.vmem [shape: bf16[16,128], index: 7, kind: output, shape index: {}]  }
   0x1   :  { %455 = vmatprep.subr.bf16.mxu0 %v542_v0  ;;  %v517_v1 = vld [vmem:[%s701_s1 + $0x38] sm:$0xff]   ;;  %471 = vmatprep.mubr.msk.bf16.mxu0 %vm543_vm0, %v542_v0  ;;  %v518_v2 = vld [vmem:[%s701_s1 + $0x30] sm:$0xff]   ;;  %v519_v3 = vld [vmem:[%s701_s1 + $0x28] sm:$0xff]  }
   0x2   :  { %475 = vmatprep.subr.bf16.mxu1 %v542_v0  ;;  %491 = vmatprep.mubr.msk.bf16.mxu1 %vm543_vm0, %v542_v0  ;;  %v526_v4 = vld [vmem:[%s702_s3 + $0x38] sm:$0xff]   ;;  %v520_v5 = vld [vmem:[%s701_s1 + $0x20] sm:$0xff]   ;;  %v527_v6 = vld [vmem:[%s702_s3 + $0x30] sm:$0xff]  }
   0x3   :  { %456 = vmatpush3.bf16.msra.mxu0 %v517_v1  ;;  %476 = vmatpush3.bf16.msra.mxu1 %v526_v4  ;;  %v521_v7 = vld [vmem:[%s701_s1 + $0x18] sm:$0xff]   ;;  %v528_v8 = vld [vmem:[%s702_s3 + $0x28] sm:$0xff]   ;;  %v522_v9 = vld [vmem:[%s701_s1 + $0x10] sm:$0xff]  }
   0x4   :  { %457 = vmatprep.subr.bf16.mxu0 %v542_v0  ;;  %477 = vmatprep.subr.bf16.mxu1 %v542_v0  ;;  %v529_v10 = vld [vmem:[%s702_s3 + $0x20] sm:$0xff]   ;;  %v523_v11 = vld [vmem:[%s701_s1 + $0x8] sm:$0xff]   ;;  %v530_v12 = vld [vmem:[%s702_s3 + $0x18] sm:$0xff]  }
   0x5   :  { %v524_v13 = vld [vmem:[%s701_s1] sm:$0xff]   ;;  %v531_v15 = vld [vmem:[%s702_s3 + $0x10] sm:$0xff]   ;;  %v532_v16 = vld [vmem:[%s702_s3 + $0x8] sm:$0xff]  }
   0x6   :  { %v525_v14 = vld [vmem:[%s703_s0] sm:$0xff]   ;;  %v534_v18 = vld [vmem:[%s704_s5 + $0x38] sm:$0xff]   ;;  %v535_v19 = vld [vmem:[%s704_s5 + $0x30] sm:$0xff]  }
   0x7   :  { %458 = vmatpush3.bf16.msra.mxu0 %v518_v2  ;;  %478 = vmatpush3.bf16.msra.mxu1 %v527_v6  ;;  %v533_v17 = vld [vmem:[%s702_s3] sm:$0xff]   ;;  %v536_v20 = vld [vmem:[%s704_s5 + $0x28] sm:$0xff]   ;;  %v538_v22 = vld [vmem:[%s704_s5 + $0x18] sm:$0xff]  }
   0x8   :  { %459 = vmatprep.subr.bf16.mxu0 %v542_v0  ;;  %479 = vmatprep.subr.bf16.mxu1 %v542_v0  ;;  %v537_v21 = vld [vmem:[%s704_s5 + $0x20] sm:$0xff]   ;;  %v539_v33 = vld [vmem:[%s704_s5 + $0x10] sm:$0xff]   ;;  %v540_v34 = vld [vmem:[%s704_s5 + $0x8] sm:$0xff]  }
   0x9   :  { %v391_v23 = vld [vmem:[%s705_s2] ss:$0 sm:$0xff] }
   0xa   :  { %v541_v35 = vld [vmem:[%s704_s5] sm:$0xff]  }
   0xb   :  { %460 = vmatpush3.bf16.msra.mxu0 %v519_v3  ;;  %480 = vmatpush3.bf16.msra.mxu1 %v528_v8  ;;  %v401_v36 = vld [vmem:[%s706_s4] ss:$0 sm:$0xff] }
   0xc   :  { %461 = vmatprep.subr.bf16.mxu0 %v542_v0  ;;  %481 = vmatprep.subr.bf16.mxu1 %v542_v0  ;;  %v410_v47 = vld [vmem:[%s707_s6] ss:$0 sm:$0xff] }
   0xf   :  { %462 = vmatpush3.bf16.msra.mxu0 %v520_v5  ;;  %482 = vmatpush3.bf16.msra.mxu1 %v529_v10 }
  0x10   :  { %463 = vmatprep.subr.bf16.mxu0 %v542_v0  ;;  %483 = vmatprep.subr.bf16.mxu1 %v542_v0 }
  0x13   :  { %464 = vmatpush3.bf16.msra.mxu0 %v521_v7  ;;  %484 = vmatpush3.bf16.msra.mxu1 %v530_v12 }
  0x14   :  { %465 = vmatprep.subr.bf16.mxu0 %v542_v0  ;;  %485 = vmatprep.subr.bf16.mxu1 %v542_v0 }
  0x17   :  { %466 = vmatpush3.bf16.msra.mxu0 %v522_v9  ;;  %486 = vmatpush3.bf16.msra.mxu1 %v531_v15 }
  0x18   :  { %467 = vmatprep.subr.bf16.mxu0 %v542_v0  ;;  %487 = vmatprep.subr.bf16.mxu1 %v542_v0 }
  0x1b   :  { %468 = vmatpush3.bf16.msra.mxu0 %v523_v11  ;;  %488 = vmatpush3.bf16.msra.mxu1 %v532_v16 }
  0x1c   :  { %469 = vmatprep.subr.bf16.mxu0 %v542_v0  ;;  %489 = vmatprep.subr.bf16.mxu1 %v542_v0 }
  0x1f   :  { %470 = vmatpush3.bf16.msra.mxu0 %v524_v13  ;;  %490 = vmatpush3.bf16.msra.mxu1 %v533_v17 }
  0x20   :  { %495 = vmatprep.subr.bf16.mxu0 %v542_v0 }
  0x22   :  { %472 = vmatmul.mubr.bf16.vlgmr.msra.gmra.mxu0 %v525_v14 }
  0x23   :  { %511 = vmatprep.mubr.msk.bf16.mxu0 %vm543_vm0, %v542_v0  ;;  %496 = vmatpush3.bf16.msra.mxu0 %v534_v18 }
  0x24   :  { %497 = vmatprep.subr.bf16.mxu0 %v542_v0 }
  0x27   :  { %498 = vmatpush3.bf16.msra.mxu0 %v535_v19 }
  0x28   :  { %499 = vmatprep.subr.bf16.mxu0 %v542_v0 }
  0x2b   :  { %500 = vmatpush3.bf16.msra.mxu0 %v536_v20 }
  0x2c   :  { %501 = vmatprep.subr.bf16.mxu0 %v542_v0 }
  0x2f   :  { %502 = vmatpush3.bf16.msra.mxu0 %v537_v21 }
  0x30   :  { %503 = vmatprep.subr.bf16.mxu0 %v542_v0 }
  0x33   :  { %504 = vmatpush3.bf16.msra.mxu0 %v538_v22 }
  0x34   :  { %505 = vmatprep.subr.bf16.mxu0 %v542_v0 }
  0x37   :  { %506 = vmatpush3.bf16.msra.mxu0 %v539_v33 }
  0x38   :  { %507 = vmatprep.subr.bf16.mxu0 %v542_v0 }
  0x3b   :  { %508 = vmatpush3.bf16.msra.mxu0 %v540_v34 }
  0x3c   :  { %509 = vmatprep.subr.bf16.mxu0 %v542_v0 }
  0x3f   :  { %510 = vmatpush3.bf16.msra.mxu0 %v541_v35 }
  0xe2   :  { %v140_v24 = vpop.f32.mrf.mxu0 }
  0xe3   :  { %v141_v26 = vadd.f32 %v391_v23, %v140_v24 }
  0xe4   :  { %v473_v25 = vpop.f32.mrf.mxu0 }
  0xe5   :  { %v147_v30 = vmax.f32 %v141_v26, 0.0 }
  0xe6   :  { %v143_v27 = vpop.f32.mrf.mxu0 }
  0xe7   :  { %v144_v28 = vadd.f32 %v391_v23, %v143_v27 }
  0xe8   :  { %v474_v29 = vpop.f32.mrf.mxu0 }
  0xe9   :  { %v148_v31 = vmax.f32 %v144_v28, 0.0 }
  0xeb   :  { %v149_v32 = vpack.c.bf16 %v148_v31, %v147_v30 }
  0xed   :  { %492 = vmatmul.mubr.bf16.vlgmr.msra.gmra.mxu1 %v149_v32 }
 0x1ad   :  { %v255_v37 = vpop.f32.mrf.mxu1 }
 0x1ae   :  { %v256_v39 = vadd.f32 %v401_v36, %v255_v37 }
 0x1af   :  { %v493_v38 = vpop.f32.mrf.mxu1 }
 0x1b0   :  { %v262_v43 = vmax.f32 %v256_v39, 0.0 }
 0x1b1   :  { %v258_v40 = vpop.f32.mrf.mxu1 }
 0x1b2   :  { %v259_v41 = vadd.f32 %v401_v36, %v258_v40 }
 0x1b3   :  { %v494_v42 = vpop.f32.mrf.mxu1 }
 0x1b4   :  { %v263_v44 = vmax.f32 %v259_v41, 0.0 }
 0x1b6   :  { %v264_v45 = vpack.c.bf16 %v263_v44, %v262_v43 }
 0x1b8   :  { %512 = vmatmul.mubr.bf16.vlgmr.msra.gmra.mxu0 %v264_v45 }
 0x278   :  { %v370_v46 = vpop.f32.mrf.mxu0 }
 0x279   :  { %v371_v50 = vadd.f32 %v410_v47, %v370_v46 }
 0x27a   :  { %v513_v48 = vpop.f32.mrf.mxu0 }
 0x27c   :  { %v373_v49 = vpop.f32.mrf.mxu0 }
 0x27d   :  { %v374_v51 = vadd.f32 %v410_v47, %v373_v49 }
 0x27e   :  { %v514_v52 = vpop.f32.mrf.mxu0 }
 0x27f   :  { %v426_v53 = vpack.c.bf16 %v374_v51, %v371_v50 }
 0x281   :  { %427 = vst [vmem:[%s708_s7] sm:$0xff] %v426_v53  }

// kernel: mlp_forward.1
= control target key start
LH: loop header
LB: loop body
LE: loop exit
PB: predicated region body
PF: predicated region fallthrough
CT: control target
= control target key end

     0   :  { %v542_v0 = vmov 0.0   ;;  %vm543_vm0 = vmmov 0   ;;  %s701_s1 = inlined_call_operand.vmem [shape: bf16[128,128], index: 1, kind: input, shape index: {}]   ;;  %s702_s3 = inlined_call_operand.vmem [shape: bf16[128,128], index: 3, kind: input, shape index: {}]   ;;  %s703_s0 = inlined_call_operand.vmem [shape: bf16[16,128], index: 0, kind: input, shape index: {}]   ;;  %s704_s5 = inlined_call_operand.vmem [shape: bf16[128,128], index: 5, kind: input, shape index: {}]   ;;  %s705_s2 = inlined_call_operand.vmem [shape: f32[1,128], index: 2, kind: input, shape index: {}]   ;;  %s706_s4 = inlined_call_operand.vmem [shape: f32[1,128], index: 4, kind: input, shape index: {}]   ;;  %s707_s6 = inlined_call_operand.vmem [shape: f32[1,128], index: 6, kind: input, shape index: {}]   ;;  %s708_s7 = inlined_call_operand.vmem [shape: bf16[16,128], index: 7, kind: output, shape index: {}]  }
   0x1   :  { %455 = vmatprep.subr.bf16.mxu0 %v542_v0  ;;  %v517_v1 = vld [vmem:[%s701_s1 + $0x38] sm:$0xff]   ;;  %471 = vmatprep.mubr.msk.bf16.mxu0 %vm543_vm0, %v542_v0  ;;  %v518_v2 = vld [vmem:[%s701_s1 + $0x30] sm:$0xff]   ;;  %v519_v3 = vld [vmem:[%s701_s1 + $0x28] sm:$0xff]  }
   0x2   :  { %475 = vmatprep.subr.bf16.mxu1 %v542_v0  ;;  %491 = vmatprep.mubr.msk.bf16.mxu1 %vm543_vm0, %v542_v0  ;;  %v526_v4 = vld [vmem:[%s702_s3 + $0x38] sm:$0xff]   ;;  %v520_v5 = vld [vmem:[%s701_s1 + $0x20] sm:$0xff]   ;;  %v527_v6 = vld [vmem:[%s702_s3 + $0x30] sm:$0xff]  }
   0x3   :  { %456 = vmatpush3.bf16.msra.mxu0 %v517_v1  ;;  %476 = vmatpush3.bf16.msra.mxu1 %v526_v4  ;;  %v521_v7 = vld [vmem:[%s701_s1 + $0x18] sm:$0xff]   ;;  %v528_v8 = vld [vmem:[%s702_s3 + $0x28] sm:$0xff]   ;;  %v522_v9 = vld [vmem:[%s701_s1 + $0x10] sm:$0xff]  }
   0x4   :  { %457 = vmatprep.subr.bf16.mxu0 %v542_v0  ;;  %477 = vmatprep.subr.bf16.mxu1 %v542_v0  ;;  %v529_v10 = vld [vmem:[%s702_s3 + $0x20] sm:$0xff]   ;;  %v523_v11 = vld [vmem:[%s701_s1 + $0x8] sm:$0xff]   ;;  %v530_v12 = vld [vmem:[%s702_s3 + $0x18] sm:$0xff]  }
   0x5   :  { %v524_v13 = vld [vmem:[%s701_s1] sm:$0xff]   ;;  %v531_v15 = vld [vmem:[%s702_s3 + $0x10] sm:$0xff]   ;;  %v532_v16 = vld [vmem:[%s702_s3 + $0x8] sm:$0xff]  }
   0x6   :  { %v525_v14 = vld [vmem:[%s703_s0] sm:$0xff]   ;;  %v534_v18 = vld [vmem:[%s704_s5 + $0x38] sm:$0xff]   ;;  %v535_v19 = vld [vmem:[%s704_s5 + $0x30] sm:$0xff]  }
   0x7   :  { %458 = vmatpush3.bf16.msra.mxu0 %v518_v2  ;;  %478 = vmatpush3.bf16.msra.mxu1 %v527_v6  ;;  %v533_v17 = vld [vmem:[%s702_s3] sm:$0xff]   ;;  %v536_v20 = vld [vmem:[%s704_s5 + $0x28] sm:$0xff]   ;;  %v538_v22 = vld [vmem:[%s704_s5 + $0x18] sm:$0xff]  }
   0x8   :  { %459 = vmatprep.subr.bf16.mxu0 %v542_v0  ;;  %479 = vmatprep.subr.bf16.mxu1 %v542_v0  ;;  %v537_v21 = vld [vmem:[%s704_s5 + $0x20] sm:$0xff]   ;;  %v539_v33 = vld [vmem:[%s704_s5 + $0x10] sm:$0xff]   ;;  %v540_v34 = vld [vmem:[%s704_s5 + $0x8] sm:$0xff]  }
   0x9   :  { %v391_v23 = vld [vmem:[%s705_s2] ss:$0 sm:$0xff] }
   0xa   :  { %v541_v35 = vld [vmem:[%s704_s5] sm:$0xff]  }
   0xb   :  { %460 = vmatpush3.bf16.msra.mxu0 %v519_v3  ;;  %480 = vmatpush3.bf16.msra.mxu1 %v528_v8  ;;  %v401_v36 = vld [vmem:[%s706_s4] ss:$0 sm:$0xff] }
   0xc   :  { %461 = vmatprep.subr.bf16.mxu0 %v542_v0  ;;  %481 = vmatprep.subr.bf16.mxu1 %v542_v0  ;;  %v410_v47 = vld [vmem:[%s707_s6] ss:$0 sm:$0xff] }
   0xf   :  { %462 = vmatpush3.bf16.msra.mxu0 %v520_v5  ;;  %482 = vmatpush3.bf16.msra.mxu1 %v529_v10 }
  0x10   :  { %463 = vmatprep.subr.bf16.mxu0 %v542_v0  ;;  %483 = vmatprep.subr.bf16.mxu1 %v542_v0 }
  0x13   :  { %464 = vmatpush3.bf16.msra.mxu0 %v521_v7  ;;  %484 = vmatpush3.bf16.msra.mxu1 %v530_v12 }
  0x14   :  { %465 = vmatprep.subr.bf16.mxu0 %v542_v0  ;;  %485 = vmatprep.subr.bf16.mxu1 %v542_v0 }
  0x17   :  { %466 = vmatpush3.bf16.msra.mxu0 %v522_v9  ;;  %486 = vmatpush3.bf16.msra.mxu1 %v531_v15 }
  0x18   :  { %467 = vmatprep.subr.bf16.mxu0 %v542_v0  ;;  %487 = vmatprep.subr.bf16.mxu1 %v542_v0 }
  0x1b   :  { %468 = vmatpush3.bf16.msra.mxu0 %v523_v11  ;;  %488 = vmatpush3.bf16.msra.mxu1 %v532_v16 }
  0x1c   :  { %469 = vmatprep.subr.bf16.mxu0 %v542_v0  ;;  %489 = vmatprep.subr.bf16.mxu1 %v542_v0 }
  0x1f   :  { %470 = vmatpush3.bf16.msra.mxu0 %v524_v13  ;;  %490 = vmatpush3.bf16.msra.mxu1 %v533_v17 }
  0x20   :  { %495 = vmatprep.subr.bf16.mxu0 %v542_v0 }
  0x22   :  { %472 = vmatmul.mubr.bf16.vlgmr.msra.gmra.mxu0 %v525_v14 }
  0x23   :  { %511 = vmatprep.mubr.msk.bf16.mxu0 %vm543_vm0, %v542_v0  ;;  %496 = vmatpush3.bf16.msra.mxu0 %v534_v18 }
  0x24   :  { %497 = vmatprep.subr.bf16.mxu0 %v542_v0 }
  0x27   :  { %498 = vmatpush3.bf16.msra.mxu0 %v535_v19 }
  0x28   :  { %499 = vmatprep.subr.bf16.mxu0 %v542_v0 }
  0x2b   :  { %500 = vmatpush3.bf16.msra.mxu0 %v536_v20 }
  0x2c   :  { %501 = vmatprep.subr.bf16.mxu0 %v542_v0 }
  0x2f   :  { %502 = vmatpush3.bf16.msra.mxu0 %v537_v21 }
  0x30   :  { %503 = vmatprep.subr.bf16.mxu0 %v542_v0 }
  0x33   :  { %504 = vmatpush3.bf16.msra.mxu0 %v538_v22 }
  0x34   :  { %505 = vmatprep.subr.bf16.mxu0 %v542_v0 }
  0x37   :  { %506 = vmatpush3.bf16.msra.mxu0 %v539_v33 }
  0x38   :  { %507 = vmatprep.subr.bf16.mxu0 %v542_v0 }
  0x3b   :  { %508 = vmatpush3.bf16.msra.mxu0 %v540_v34 }
  0x3c   :  { %509 = vmatprep.subr.bf16.mxu0 %v542_v0 }
  0x3f   :  { %510 = vmatpush3.bf16.msra.mxu0 %v541_v35 }
  0xe2   :  { %v140_v24 = vpop.f32.mrf.mxu0 }
  0xe3   :  { %v141_v26 = vadd.f32 %v391_v23, %v140_v24 }
  0xe4   :  { %v473_v25 = vpop.f32.mrf.mxu0 }
  0xe5   :  { %v147_v30 = vmax.f32 %v141_v26, 0.0 }
  0xe6   :  { %v143_v27 = vpop.f32.mrf.mxu0 }
  0xe7   :  { %v144_v28 = vadd.f32 %v391_v23, %v143_v27 }
  0xe8   :  { %v474_v29 = vpop.f32.mrf.mxu0 }
  0xe9   :  { %v148_v31 = vmax.f32 %v144_v28, 0.0 }
  0xeb   :  { %v149_v32 = vpack.c.bf16 %v148_v31, %v147_v30 }
  0xed   :  { %492 = vmatmul.mubr.bf16.vlgmr.msra.gmra.mxu1 %v149_v32 }
 0x1ad   :  { %v255_v37 = vpop.f32.mrf.mxu1 }
 0x1ae   :  { %v256_v39 = vadd.f32 %v401_v36, %v255_v37 }
 0x1af   :  { %v493_v38 = vpop.f32.mrf.mxu1 }
 0x1b0   :  { %v262_v43 = vmax.f32 %v256_v39, 0.0 }
 0x1b1   :  { %v258_v40 = vpop.f32.mrf.mxu1 }
 0x1b2   :  { %v259_v41 = vadd.f32 %v401_v36, %v258_v40 }
 0x1b3   :  { %v494_v42 = vpop.f32.mrf.mxu1 }
 0x1b4   :  { %v263_v44 = vmax.f32 %v259_v41, 0.0 }
 0x1b6   :  { %v264_v45 = vpack.c.bf16 %v263_v44, %v262_v43 }
 0x1b8   :  { %512 = vmatmul.mubr.bf16.vlgmr.msra.gmra.mxu0 %v264_v45 }
 0x278   :  { %v370_v46 = vpop.f32.mrf.mxu0 }
 0x279   :  { %v371_v50 = vadd.f32 %v410_v47, %v370_v46 }
 0x27a   :  { %v513_v48 = vpop.f32.mrf.mxu0 }
 0x27c   :  { %v373_v49 = vpop.f32.mrf.mxu0 }
 0x27d   :  { %v374_v51 = vadd.f32 %v410_v47, %v373_v49 }
 0x27e   :  { %v514_v52 = vpop.f32.mrf.mxu0 }
 0x27f   :  { %v426_v53 = vpack.c.bf16 %v374_v51, %v371_v50 }
 0x281   :  { %427 = vst [vmem:[%s708_s7] sm:$0xff] %v426_v53  }

</bundles_post_ra>
